<compile_context>
chip_gen: v6e
topology: v6e:2x2x1
jax: 0.10.0
libtpu: 0.0.40
codegen_flags: <defaults>
</compile_context>

<pallas_src>
import math
from functools import partial

import jax
import jax.numpy as jnp
from jax.experimental import pallas as pl
from jax.experimental.pallas import tpu as pltpu


# --------------------------------------------------------------------------
# Kernel
# --------------------------------------------------------------------------
def actor_kernel(x_ref, w1_ref, b1_ref, w2_ref, b2_ref, w3_ref, b3_ref, o_ref):
    # fc1 + ReLU   (bf16 x bf16 -> f32 accumulate on the MXU)
    h1 = jnp.dot(x_ref[...], w1_ref[...], preferred_element_type=jnp.float32)
    h1 = jnp.maximum(h1 + b1_ref[...], 0.0).astype(jnp.bfloat16)
    # fc2 + ReLU
    h2 = jnp.dot(h1, w2_ref[...], preferred_element_type=jnp.float32)
    h2 = jnp.maximum(h2 + b2_ref[...], 0.0).astype(jnp.bfloat16)
    # fc3 + Tanh (tanh in f32 on the EUP, then cast to output dtype)
    h3 = jnp.dot(h2, w3_ref[...], preferred_element_type=jnp.float32)
    o_ref[...] = jnp.tanh(h3 + b3_ref[...]).astype(o_ref.dtype)


# --------------------------------------------------------------------------
# Wrapper
# --------------------------------------------------------------------------
def _round_up(n, m):
    return ((n + m - 1) // m) * m


@partial(jax.jit, static_argnames=("nb_actions", "batch_tile"))
def actor_forward(x, packed_params, nb_actions, *, batch_tile=256):
    """x: (batch, nb_states) f32/bf16. packed_params: 128-padded bf16/f32 params."""
    w1, b1, w2, b2, w3, b3 = packed_params
    batch, nb_states = x.shape
    s_pad, h1_pad = w1.shape
    h2_pad = w2.shape[1]
    a_pad = w3.shape[1]

    # Batch tile: big enough to amortize weight reuse / fill the MXU M dim,
    # but never larger than the (8-sublane-aligned) batch itself.
    tb = min(batch_tile, _round_up(batch, 8))
    batch_pad = _round_up(batch, tb)

    # Zero-pad x to (batch_pad, s_pad) and cast to bf16 (MXU input format).
    xp = jnp.zeros((batch_pad, s_pad), jnp.bfloat16)
    xp = xp.at[:batch, :nb_states].set(x.astype(jnp.bfloat16))

    grid = (pl.cdiv(batch_pad, tb),)

    out = pl.pallas_call(
        actor_kernel,
        out_shape=jax.ShapeDtypeStruct((batch_pad, a_pad), jnp.float32),
        grid=grid,
        in_specs=[
            pl.BlockSpec((tb, s_pad), lambda i: (i, 0)),        # x tile
            pl.BlockSpec((s_pad, h1_pad), lambda i: (0, 0)),    # w1 (VMEM-resident)
            pl.BlockSpec((1, h1_pad), lambda i: (0, 0)),        # b1
            pl.BlockSpec((h1_pad, h2_pad), lambda i: (0, 0)),   # w2 (VMEM-resident)
            pl.BlockSpec((1, h2_pad), lambda i: (0, 0)),        # b2
            pl.BlockSpec((h2_pad, a_pad), lambda i: (0, 0)),    # w3 (VMEM-resident)
            pl.BlockSpec((1, a_pad), lambda i: (0, 0)),         # b3
        ],
        out_specs=pl.BlockSpec((tb, a_pad), lambda i: (i, 0)),
        compiler_params=pltpu.CompilerParams(
            dimension_semantics=("parallel",),  # megacore / v7x 2-TC sharding
        ),
    )(xp, w1, b1, w2, b2, w3, b3)

    # Slice away batch padding and the lane padding of the action dim.
    return out[:batch, :nb_actions]


# --------------------------------------------------------------------------
# Parameter init (matches the PyTorch module's scheme) + packing
# --------------------------------------------------------------------------
def init_actor_params(key, nb_states, nb_actions, hidden1=400, hidden2=300,
                      init_w=0.003):
    """Logical f32 params; weights stored (in, out) so the kernel does x @ W + b.

    fanin_init in the reference uses v = 1/sqrt(weight.size(0)) where the
    PyTorch weight is (out, in) -> the bound is 1/sqrt(out_features)
    (reproducing the well-known quirk of the original DDPG code).
    Biases use nn.Linear's default uniform(-1/sqrt(fan_in), 1/sqrt(fan_in)).
    """
    ks = jax.random.split(key, 6)

    def uniform(k, shape, bound):
        return jax.random.uniform(k, shape, jnp.float32, -bound, bound)

    v1 = 1.0 / math.sqrt(hidden1)   # fanin_init: size[0] of the (out, in) weight
    v2 = 1.0 / math.sqrt(hidden2)
    w1 = uniform(ks[0], (nb_states, hidden1), v1)
    b1 = uniform(ks[1], (1, hidden1), 1.0 / math.sqrt(nb_states))
    w2 = uniform(ks[2], (hidden1, hidden2), v2)
    b2 = uniform(ks[3], (1, hidden2), 1.0 / math.sqrt(hidden1))
    w3 = uniform(ks[4], (hidden2, nb_actions), init_w)
    b3 = uniform(ks[5], (1, nb_actions), 1.0 / math.sqrt(hidden2))
    return (w1, b1, w2, b2, w3, b3)


def pack_actor_params(params, lane=128):
    """Zero-pad every feature dim to a multiple of 128; weights -> bf16, biases f32.

    Zero padding is exact: padded hidden units are ReLU(0 + 0) = 0 and padded
    weight rows are zero, so they never contribute to the real outputs.
    """
    w1, b1, w2, b2, w3, b3 = params

    def pad(a, shape, dtype):
        out = jnp.zeros(shape, dtype)
        return out.at[tuple(slice(0, s) for s in a.shape)].set(a.astype(dtype))

    s_pad = _round_up(w1.shape[0], lane)
    h1_pad = _round_up(w1.shape[1], lane)
    h2_pad = _round_up(w2.shape[1], lane)
    a_pad = _round_up(w3.shape[1], lane)

    return (
        pad(w1, (s_pad, h1_pad), jnp.bfloat16),
        pad(b1, (1, h1_pad), jnp.float32),
        pad(w2, (h1_pad, h2_pad), jnp.bfloat16),
        pad(b2, (1, h2_pad), jnp.float32),
        pad(w3, (h2_pad, a_pad), jnp.bfloat16),
        pad(b3, (1, a_pad), jnp.float32),
    )


def actor_reference(x, params):
    """Pure-JAX f32 reference (same math as the PyTorch forward)."""
    (w1, b1, w2, b2, w3, b3) = params
    h = jnp.maximum(x @ w1 + b1, 0.0)
    h = jnp.maximum(h @ w2 + b2, 0.0)
    return jnp.tanh(h @ w3 + b3)


# --------------------------------------------------------------------------
# Demo / correctness check
# --------------------------------------------------------------------------
if __name__ == "__main__":
    key = jax.random.PRNGKey(0)
    k_param, k_x = jax.random.split(key)

    batch, nb_states, nb_actions = 2, 16, 4
    hidden1, hidden2 = 400, 300

    params_f32 = init_actor_params(k_param, nb_states, nb_actions,
                                   hidden1, hidden2)
    packed = pack_actor_params(params_f32)
    x = jax.random.normal(k_x, (batch, nb_states), dtype=jnp.float32)

    out = actor_forward(x, packed, nb_actions)
    out = jax.block_until_ready(out)

    ref = actor_reference(x, params_f32)
    assert out.shape == (batch, nb_actions), out.shape
    # bf16 weights/activations with f32 accumulation: loose-but-tight-enough
    # tolerance vs the full-f32 reference (tanh output is in [-1, 1]).
    assert jnp.allclose(out, ref, atol=2e-2, rtol=2e-2), "mismatch vs reference"

    print("KERNEL_OK")
</pallas_src>

<mosaic_0001>
module attributes {stable_mosaic.version = 11 : i64} {
  func.func @actor_kernel(%arg0: i32, %arg1: memref<8x128xbf16, #tpu.memory_space<vmem>>, %arg2: memref<128x512xbf16, #tpu.memory_space<vmem>>, %arg3: memref<1x512xf32, #tpu.memory_space<vmem>>, %arg4: memref<512x384xbf16, #tpu.memory_space<vmem>>, %arg5: memref<1x384xf32, #tpu.memory_space<vmem>>, %arg6: memref<384x128xbf16, #tpu.memory_space<vmem>>, %arg7: memref<1x128xf32, #tpu.memory_space<vmem>>, %arg8: memref<8x128xf32, #tpu.memory_space<vmem>>) attributes {dimension_semantics = [#tpu.dimension_semantics<parallel>], iteration_bounds = array<i64: 1>, scalar_prefetch = 0 : i64, scratch_operands = 0 : i64, tpu.core_type = #tpu.core_type<tc>, window_params = [{transform_indices = @transform_0, window_bounds = array<i64: 8, 128>}, {pipeline_mode = #tpu.pipeline_mode<synchronous>, transform_indices = @transform_1, window_bounds = array<i64: 128, 512>}, {pipeline_mode = #tpu.pipeline_mode<synchronous>, transform_indices = @transform_2, window_bounds = array<i64: 1, 512>}, {pipeline_mode = #tpu.pipeline_mode<synchronous>, transform_indices = @transform_3, window_bounds = array<i64: 512, 384>}, {pipeline_mode = #tpu.pipeline_mode<synchronous>, transform_indices = @transform_4, window_bounds = array<i64: 1, 384>}, {pipeline_mode = #tpu.pipeline_mode<synchronous>, transform_indices = @transform_5, window_bounds = array<i64: 384, 128>}, {pipeline_mode = #tpu.pipeline_mode<synchronous>, transform_indices = @transform_6, window_bounds = array<i64: 1, 128>}, {transform_indices = @transform_7, window_bounds = array<i64: 8, 128>}]} {
    %c0 = arith.constant 0 : index
    %c0_0 = arith.constant 0 : index
    %0 = vector.load %arg1[%c0, %c0_0] : memref<8x128xbf16, #tpu.memory_space<vmem>>, vector<8x128xbf16>
    %c0_1 = arith.constant 0 : index
    %c0_2 = arith.constant 0 : index
    %1 = vector.load %arg2[%c0_1, %c0_2] : memref<128x512xbf16, #tpu.memory_space<vmem>>, vector<128x512xbf16>
    %cst = arith.constant dense<0.000000e+00> : vector<8x512xf32>
    %2 = tpu.matmul %0, %1, %cst {dimension_numbers = #tpu.dot_dimension_numbers<[1], [0], [0], [1], [0, 0, 1, 1], [], []>} : vector<8x128xbf16>, vector<128x512xbf16>, vector<8x512xf32> -> vector<8x512xf32>
    %c0_3 = arith.constant 0 : index
    %c0_4 = arith.constant 0 : index
    %3 = vector.load %arg3[%c0_3, %c0_4] : memref<1x512xf32, #tpu.memory_space<vmem>>, vector<1x512xf32>
    %4 = vector.broadcast %3 : vector<1x512xf32> to vector<8x512xf32>
    %5 = arith.addf %2, %4 : vector<8x512xf32>
    %cst_5 = arith.constant 0.000000e+00 : f32
    %6 = vector.broadcast %cst_5 : f32 to vector<8x512xf32>
    %7 = arith.maximumf %5, %6 : vector<8x512xf32>
    %8 = arith.truncf %7 : vector<8x512xf32> to vector<8x512xbf16>
    %c0_6 = arith.constant 0 : index
    %c0_7 = arith.constant 0 : index
    %9 = vector.load %arg4[%c0_6, %c0_7] : memref<512x384xbf16, #tpu.memory_space<vmem>>, vector<512x384xbf16>
    %cst_8 = arith.constant dense<0.000000e+00> : vector<8x384xf32>
    %10 = tpu.matmul %8, %9, %cst_8 {dimension_numbers = #tpu.dot_dimension_numbers<[1], [0], [0], [1], [0, 0, 1, 1], [], []>} : vector<8x512xbf16>, vector<512x384xbf16>, vector<8x384xf32> -> vector<8x384xf32>
    %c0_9 = arith.constant 0 : index
    %c0_10 = arith.constant 0 : index
    %11 = vector.load %arg5[%c0_9, %c0_10] : memref<1x384xf32, #tpu.memory_space<vmem>>, vector<1x384xf32>
    %12 = vector.broadcast %11 : vector<1x384xf32> to vector<8x384xf32>
    %13 = arith.addf %10, %12 : vector<8x384xf32>
    %cst_11 = arith.constant 0.000000e+00 : f32
    %14 = vector.broadcast %cst_11 : f32 to vector<8x384xf32>
    %15 = arith.maximumf %13, %14 : vector<8x384xf32>
    %16 = arith.truncf %15 : vector<8x384xf32> to vector<8x384xbf16>
    %c0_12 = arith.constant 0 : index
    %c0_13 = arith.constant 0 : index
    %17 = vector.load %arg6[%c0_12, %c0_13] : memref<384x128xbf16, #tpu.memory_space<vmem>>, vector<384x128xbf16>
    %cst_14 = arith.constant dense<0.000000e+00> : vector<8x128xf32>
    %18 = tpu.matmul %16, %17, %cst_14 {dimension_numbers = #tpu.dot_dimension_numbers<[1], [0], [0], [1], [0, 0, 1, 1], [], []>} : vector<8x384xbf16>, vector<384x128xbf16>, vector<8x128xf32> -> vector<8x128xf32>
    %c0_15 = arith.constant 0 : index
    %c0_16 = arith.constant 0 : index
    %19 = vector.load %arg7[%c0_15, %c0_16] : memref<1x128xf32, #tpu.memory_space<vmem>>, vector<1x128xf32>
    %20 = vector.broadcast %19 : vector<1x128xf32> to vector<8x128xf32>
    %21 = arith.addf %18, %20 : vector<8x128xf32>
    %22 = math.tanh %21 : vector<8x128xf32>
    %c0_17 = arith.constant 0 : index
    %c0_18 = arith.constant 0 : index
    %23 = vector.load %arg8[%c0_17, %c0_18] : memref<8x128xf32, #tpu.memory_space<vmem>>, vector<8x128xf32>
    tpu.vector_store %arg8[%c0_17, %c0_18], %22 {strides = array<i32>} : memref<8x128xf32, #tpu.memory_space<vmem>>, vector<8x128xf32>,
    return
  }
  func.func @transform_0(%arg0: i32) -> (i32, i32) {
    %c0_i32 = arith.constant 0 : i32
    %c0_i32_0 = arith.constant 0 : i32
    return %arg0, %c0_i32 : i32, i32
  }
  func.func @transform_1(%arg0: i32) -> (i32, i32) {
    %c0_i32 = arith.constant 0 : i32
    %c0_i32_0 = arith.constant 0 : i32
    %c0_i32_1 = arith.constant 0 : i32
    return %c0_i32, %c0_i32_0 : i32, i32
  }
  func.func @transform_2(%arg0: i32) -> (i32, i32) {
    %c0_i32 = arith.constant 0 : i32
    %c0_i32_0 = arith.constant 0 : i32
    %c0_i32_1 = arith.constant 0 : i32
    return %c0_i32, %c0_i32_0 : i32, i32
  }
  func.func @transform_3(%arg0: i32) -> (i32, i32) {
    %c0_i32 = arith.constant 0 : i32
    %c0_i32_0 = arith.constant 0 : i32
    %c0_i32_1 = arith.constant 0 : i32
    return %c0_i32, %c0_i32_0 : i32, i32
  }
  func.func @transform_4(%arg0: i32) -> (i32, i32) {
    %c0_i32 = arith.constant 0 : i32
    %c0_i32_0 = arith.constant 0 : i32
    %c0_i32_1 = arith.constant 0 : i32
    return %c0_i32, %c0_i32_0 : i32, i32
  }
  func.func @transform_5(%arg0: i32) -> (i32, i32) {
    %c0_i32 = arith.constant 0 : i32
    %c0_i32_0 = arith.constant 0 : i32
    %c0_i32_1 = arith.constant 0 : i32
    return %c0_i32, %c0_i32_0 : i32, i32
  }
  func.func @transform_6(%arg0: i32) -> (i32, i32) {
    %c0_i32 = arith.constant 0 : i32
    %c0_i32_0 = arith.constant 0 : i32
    %c0_i32_1 = arith.constant 0 : i32
    return %c0_i32, %c0_i32_0 : i32, i32
  }
  func.func @transform_7(%arg0: i32) -> (i32, i32) {
    %c0_i32 = arith.constant 0 : i32
    %c0_i32_0 = arith.constant 0 : i32
    return %arg0, %c0_i32 : i32, i32
  }
}

</mosaic_0001>

<bundles_post_ra>
// kernel: actor_forward.1
= control target key start
LH: loop header
LB: loop body
LE: loop exit
PB: predicated region body
PF: predicated region fallthrough
CT: control target
= control target key end

     0   :  { %12 = vsyncpa [#allocation3], 0  ;;  %s2113_s0 = inlined_call_operand.vmem [shape: bf16[8,128], index: 0, kind: input, shape index: {}]   ;;  %s2114_s1 = inlined_call_operand.hbm [shape: bf16[128,512], index: 1, kind: input, shape index: {}]   ;;  %s2115_s2 = inlined_call_operand.vmem [shape: f32[1,512], index: 2, kind: input, shape index: {}]   ;;  %s2116_s3 = inlined_call_operand.hbm [shape: bf16[512,384], index: 3, kind: input, shape index: {}]   ;;  %s2117_s4 = inlined_call_operand.vmem [shape: f32[1,384], index: 4, kind: input, shape index: {}]   ;;  %s2118_s5 = inlined_call_operand.hbm [shape: bf16[384,128], index: 5, kind: input, shape index: {}]   ;;  %s2119_s6 = inlined_call_operand.vmem [shape: f32[1,128], index: 6, kind: input, shape index: {}]   ;;  %s2120_s7 = inlined_call_operand.vmem [shape: f32[8,128], index: 7, kind: output, shape index: {}]  }
   0x1   :  { %13 = vsyncpa [#allocation5], 0  ;;  %s2011_s24 = smov [#allocation4]  }
   0x2   :  { %s35_s25 = sshll.u32 %s2011_s24, 4  ;;  %s36_s25 = int_to_ptr.vmem [resolvable:$true] %s35_s25 }
   0x3   :  { %s1955_s26 = scalar_lea.vmem %s36_s25, 12288  ;;  %p1960_p1 = scmp.lt.s32.totalorder %s36_s25, %s36_s25 }
   0x4   :  { %p1956_p0 = scmp.ne.s32.totalorder %s36_s25, %s1955_s26  ;;  %p1961_p2 = scmp.lt.s32.totalorder %s1955_s26, %s1955_s26 }
   0x6   :  { %p1962_p3 = por %p1961_p2, %p1960_p1 }
   0x8   :  { %p1963_p4 = pnand %p1962_p3, %p1956_p0 }
   0xa   :  { %1966 = shalt.err (!%p1963_p4)
}
   0xb   :  { %s2012_s27 = smov 192   ;;  %s2013_s28 = smov 12  }
   0xc   :  { %41 = dma.hbm_to_vmem [thread:$0]  %s2116_s3, 12288, %s36_s25, [#allocation5], %s2012_s27, %s2012_s27, %s2013_s28  }
   0xd   :  { %s2014_s8 = smov [#allocation2]  }
   0xe   :  { %s21_s9 = sshll.u32 %s2014_s8, 4  ;;  %s22_s9 = int_to_ptr.vmem [resolvable:$true] %s21_s9 }
   0xf   :  { %s1975_s10 = scalar_lea.vmem %s22_s9, 4096  ;;  %p1980_p6 = scmp.lt.s32.totalorder %s22_s9, %s22_s9 }
  0x10   :  { %p1976_p5 = scmp.ne.s32.totalorder %s22_s9, %s1975_s10  ;;  %p1981_p7 = scmp.lt.s32.totalorder %s1975_s10, %s1975_s10 }
  0x12   :  { %p1982_p8 = por %p1981_p7, %p1980_p6 }
  0x14   :  { %p1983_p9 = pnand %p1982_p8, %p1976_p5 }
  0x16   :  { %1986 = shalt.err (!%p1983_p9)
}
  0x17   :  { %s2015_s11 = smov 256   ;;  %s2016_s12 = smov 16  }
  0x18   :  { %27 = dma.hbm_to_vmem [thread:$0]  %s2114_s1, 4096, %s22_s9, [#allocation3], %s2015_s11, %s2015_s11, %s2016_s12  }
  0x19   :  { %s2017_s15 = smov [#allocation6]  }
  0x1a   :  { %s49_s16 = sshll.u32 %s2017_s15, 4  ;;  %s50_s16 = int_to_ptr.vmem [resolvable:$true] %s49_s16 }
  0x1b   :  { %s1995_s3 = scalar_lea.vmem %s50_s16, 3072  ;;  %p2000_p11 = scmp.lt.s32.totalorder %s50_s16, %s50_s16 }
  0x1c   :  { %p1996_p10 = scmp.ne.s32.totalorder %s50_s16, %s1995_s3  ;;  %p2001_p12 = scmp.lt.s32.totalorder %s1995_s3, %s1995_s3 }
  0x1e   :  { %p2002_p13 = por %p2001_p12, %p2000_p11 }
  0x20   :  { %p2003_p0 = pnand %p2002_p13, %p1996_p10 }
  0x22   :  { %2006 = shalt.err (!%p2003_p0)
}
  0x23   :  { %s2018_s17 = smov 64   ;;  %s2019_s18 = smov 4  }
  0x24   :  { %55 = dma.hbm_to_vmem [thread:$0]  %s2118_s5, 3072, %s50_s16, [#allocation5], %s2018_s17, %s2018_s17, %s2019_s18  }
  0x25   :  { %2007 = dma.done.wait [#allocation3], 4096  }
  0x26   :  { %2008 = vsyncadd [#allocation3], 4294963200 }
  0x27   :  { %2009 = dma.done.wait [#allocation5], 15360  }
  0x28   :  { %2010 = vsyncadd [#allocation5], 4294951936  ;;  %v2020_v0 = vmov 0   ;;  %v1745_v1 = vld [vmem:[#allocation2 + $0xe4] ss:$16 sps:$4 sm:$0xff]   ;;  %vm2022_vm0 = vmmov 0  }
  0x29   :  { %315 = vmatprep.mubr.bf16.mxu0 %v2020_v0  ;;  %356 = vmatprep.mubr.bf16.mxu1 %v2020_v0  ;;  %v1747_v2 = vld [vmem:[#allocation2 + $0xec] ss:$16 sps:$4 sm:$0xff]   ;;  %v1749_v3 = vld [vmem:[#allocation2 + $0xe0] ss:$16 sps:$4 sm:$0xff]   ;;  %v1750_v4 = vld [vmem:[#allocation2 + $0xe8] ss:$16 sps:$4 sm:$0xff]  }
  0x2a   :  { %283 = vmatprep.subr.bf16.mxu0 %v1745_v1  ;;  %324 = vmatprep.subr.bf16.mxu1 %v1747_v2  ;;  %v1751_v5 = vld [vmem:[#allocation2 + $0xc4] ss:$16 sps:$4 sm:$0xff]   ;;  %v1753_v6 = vld [vmem:[#allocation2 + $0xcc] ss:$16 sps:$4 sm:$0xff]   ;;  %v1755_v7 = vld [vmem:[#allocation2 + $0xc0] ss:$16 sps:$4 sm:$0xff]  }
  0x2b   :  { %284 = vmatpush1.bf16.msra.mxu0 %v1749_v3  ;;  %325 = vmatpush1.bf16.msra.mxu1 %v1750_v4  ;;  %v1756_v8 = vld [vmem:[#allocation2 + $0xc8] ss:$16 sps:$4 sm:$0xff]   ;;  %v1757_v9 = vld [vmem:[#allocation2 + $0xa4] ss:$16 sps:$4 sm:$0xff]   ;;  %v1759_v10 = vld [vmem:[#allocation2 + $0xac] ss:$16 sps:$4 sm:$0xff]  }
  0x2c   :  { %285 = vmatprep.subr.bf16.mxu0 %v1751_v5  ;;  %326 = vmatprep.subr.bf16.mxu1 %v1753_v6  ;;  %v1761_v11 = vld [vmem:[#allocation2 + $0xa0] ss:$16 sps:$4 sm:$0xff]   ;;  %v1762_v12 = vld [vmem:[#allocation2 + $0xa8] ss:$16 sps:$4 sm:$0xff]   ;;  %v1763_v13 = vld [vmem:[#allocation2 + $0x84] ss:$16 sps:$4 sm:$0xff]  }
  0x2d   :  { %v1765_v14 = vld [vmem:[#allocation2 + $0x8c] ss:$16 sps:$4 sm:$0xff]   ;;  %v1767_v15 = vld [vmem:[#allocation2 + $0x80] ss:$16 sps:$4 sm:$0xff]   ;;  %v1768_v16 = vld [vmem:[#allocation2 + $0x88] ss:$16 sps:$4 sm:$0xff]  }
  0x2e   :  { %v1769_v17 = vld [vmem:[#allocation2 + $0x64] ss:$16 sps:$4 sm:$0xff]   ;;  %v1771_v18 = vld [vmem:[#allocation2 + $0x6c] ss:$16 sps:$4 sm:$0xff]   ;;  %v1773_v19 = vld [vmem:[#allocation2 + $0x60] ss:$16 sps:$4 sm:$0xff]  }
  0x2f   :  { %286 = vmatpush1.bf16.msra.mxu0 %v1755_v7  ;;  %327 = vmatpush1.bf16.msra.mxu1 %v1756_v8  ;;  %v1774_v20 = vld [vmem:[#allocation2 + $0x68] ss:$16 sps:$4 sm:$0xff]   ;;  %v1775_v21 = vld [vmem:[#allocation2 + $0x44] ss:$16 sps:$4 sm:$0xff]   ;;  %v1777_v22 = vld [vmem:[#allocation2 + $0x4c] ss:$16 sps:$4 sm:$0xff]  }
  0x30   :  { %287 = vmatprep.subr.bf16.mxu0 %v1757_v9  ;;  %328 = vmatprep.subr.bf16.mxu1 %v1759_v10  ;;  %v1779_v23 = vld [vmem:[#allocation2 + $0x40] ss:$16 sps:$4 sm:$0xff]   ;;  %v1780_v24 = vld [vmem:[#allocation2 + $0x48] ss:$16 sps:$4 sm:$0xff]   ;;  %v1781_v25 = vld [vmem:[#allocation2 + $0x24] ss:$16 sps:$4 sm:$0xff]  }
  0x31   :  { %v1783_v26 = vld [vmem:[#allocation2 + $0x2c] ss:$16 sps:$4 sm:$0xff]   ;;  %v1785_v27 = vld [vmem:[#allocation2 + $0x20] ss:$16 sps:$4 sm:$0xff]   ;;  %v1786_v28 = vld [vmem:[#allocation2 + $0x28] ss:$16 sps:$4 sm:$0xff]  }
  0x32   :  { %v1787_v29 = vld [vmem:[#allocation2 + $0x4] ss:$16 sps:$4 sm:$0xff]   ;;  %v1789_v30 = vld [vmem:[#allocation2 + $0xc] ss:$16 sps:$4 sm:$0xff]   ;;  %v1791_v31 = vld [vmem:[#allocation2] ss:$16 sps:$4 sm:$0xff]  }
  0x33   :  { %288 = vmatpush1.bf16.msra.mxu0 %v1761_v11  ;;  %329 = vmatpush1.bf16.msra.mxu1 %v1762_v12  ;;  %v1792_v32 = vld [vmem:[#allocation2 + $0x8] ss:$16 sps:$4 sm:$0xff]   ;;  %v68_v35 = vld [vmem:[%s2113_s0] sm:$0xf]  ;;  %v1799_v40 = vld [vmem:[#allocation4 + $0x90] ss:$12 sps:$4 sm:$0xff]  }
  0x34   :  { %289 = vmatprep.subr.bf16.mxu0 %v1763_v13  ;;  %330 = vmatprep.subr.bf16.mxu1 %v1765_v14  ;;  %v1795_v33 = vld [vmem:[#allocation4 + $0xac] ss:$12 sps:$4 sm:$0xff]   ;;  %v1793_v36 = vld [vmem:[#allocation4 + $0xa8] ss:$12 sps:$4 sm:$0xff]   ;;  %v1802_v41 = vld [vmem:[#allocation4 + $0x210] ss:$12 sps:$4 sm:$0xff]  }
  0x35   :  { %v1798_v34 = vld [vmem:[#allocation4 + $0x22c] ss:$12 sps:$4 sm:$0xff]   ;;  %v1796_v37 = vld [vmem:[#allocation4 + $0x228] ss:$12 sps:$4 sm:$0xff]   ;;  %v1813_v46 = vld [vmem:[#allocation4 + $0x64] ss:$12 sps:$4 sm:$0xff]  }
  0x36   :  { %v1801_v38 = vld [vmem:[#allocation4 + $0x94] ss:$12 sps:$4 sm:$0xff]   ;;  %v1807_v42 = vld [vmem:[#allocation4 + $0x7c] ss:$12 sps:$4 sm:$0xff]   ;;  %v1805_v44 = vld [vmem:[#allocation4 + $0x78] ss:$12 sps:$4 sm:$0xff]  }
  0x37   :  { %290 = vmatpush1.bf16.msra.mxu0 %v1767_v15  ;;  %331 = vmatpush1.bf16.msra.mxu1 %v1768_v16  ;;  %v1804_v39 = vld [vmem:[#allocation4 + $0x214] ss:$12 sps:$4 sm:$0xff]   ;;  %v1810_v43 = vld [vmem:[#allocation4 + $0x1fc] ss:$12 sps:$4 sm:$0xff]   ;;  %v1808_v45 = vld [vmem:[#allocation4 + $0x1f8] ss:$12 sps:$4 sm:$0xff]  }
  0x38   :  { %291 = vmatprep.subr.bf16.mxu0 %v1769_v17  ;;  %332 = vmatprep.subr.bf16.mxu1 %v1771_v18  ;;  %v1816_v47 = vld [vmem:[#allocation4 + $0x1e4] ss:$12 sps:$4 sm:$0xff]   ;;  %v1811_v48 = vld [vmem:[#allocation4 + $0x60] ss:$12 sps:$4 sm:$0xff]   ;;  %v1817_v52 = vld [vmem:[#allocation4 + $0x48] ss:$12 sps:$4 sm:$0xff]  }
  0x39   :  { %v1814_v49 = vld [vmem:[#allocation4 + $0x1e0] ss:$12 sps:$4 sm:$0xff]   ;;  %v1820_v53 = vld [vmem:[#allocation4 + $0x1c8] ss:$12 sps:$4 sm:$0xff]   ;;  %v1823_v56 = vld [vmem:[#allocation4 + $0x30] ss:$12 sps:$4 sm:$0xff]  }
  0x3a   :  { %v1819_v50 = vld [vmem:[#allocation4 + $0x4c] ss:$12 sps:$4 sm:$0xff]   ;;  %v1825_v54 = vld [vmem:[#allocation4 + $0x34] ss:$12 sps:$4 sm:$0xff]   ;;  %v1826_v57 = vld [vmem:[#allocation4 + $0x1b0] ss:$12 sps:$4 sm:$0xff]  }
  0x3b   :  { %292 = vmatpush1.bf16.msra.mxu0 %v1773_v19  ;;  %333 = vmatpush1.bf16.msra.mxu1 %v1774_v20  ;;  %v1822_v51 = vld [vmem:[#allocation4 + $0x1cc] ss:$12 sps:$4 sm:$0xff]   ;;  %v1828_v55 = vld [vmem:[#allocation4 + $0x1b4] ss:$12 sps:$4 sm:$0xff]   ;;  %v1831_v58 = vld [vmem:[#allocation4 + $0x1c] ss:$12 sps:$4 sm:$0xff]  }
  0x3c   :  { %293 = vmatprep.subr.bf16.mxu0 %v1775_v21  ;;  %334 = vmatprep.subr.bf16.mxu1 %v1777_v22  ;;  %v1834_v59 = vld [vmem:[#allocation4 + $0x19c] ss:$12 sps:$4 sm:$0xff]   ;;  %v1829_v60 = vld [vmem:[#allocation4 + $0x18] ss:$12 sps:$4 sm:$0xff]   ;;  %v1835_v0 = vld [vmem:[#allocation4] ss:$12 sps:$4 sm:$0xff]  }
  0x3d   :  { %v1832_v61 = vld [vmem:[#allocation4 + $0x198] ss:$12 sps:$4 sm:$0xff]   ;;  %v1838_v1 = vld [vmem:[#allocation4 + $0x180] ss:$12 sps:$4 sm:$0xff]   ;;  %v1841_v4 = vld [vmem:[#allocation4 + $0x168] ss:$12 sps:$4 sm:$0xff]  }
  0x3e   :  { %v1837_v62 = vld [vmem:[#allocation4 + $0x4] ss:$12 sps:$4 sm:$0xff]   ;;  %v1843_v2 = vld [vmem:[#allocation4 + $0x16c] ss:$12 sps:$4 sm:$0xff]   ;;  %v1844_v5 = vld [vmem:[#allocation4 + $0x2e8] ss:$12 sps:$4 sm:$0xff]  }
  0x3f   :  { %294 = vmatpush1.bf16.msra.mxu0 %v1779_v23  ;;  %335 = vmatpush1.bf16.msra.mxu1 %v1780_v24  ;;  %v1840_v63 = vld [vmem:[#allocation4 + $0x184] ss:$12 sps:$4 sm:$0xff]   ;;  %v1846_v3 = vld [vmem:[#allocation4 + $0x2ec] ss:$12 sps:$4 sm:$0xff]   ;;  %v1849_v6 = vld [vmem:[#allocation4 + $0x154] ss:$12 sps:$4 sm:$0xff]  }
  0x40   :  { %295 = vmatprep.subr.bf16.mxu0 %v1781_v25  ;;  %336 = vmatprep.subr.bf16.mxu1 %v1783_v26  ;;  %v1852_v7 = vld [vmem:[#allocation4 + $0x2d4] ss:$12 sps:$4 sm:$0xff]   ;;  %v1847_v8 = vld [vmem:[#allocation4 + $0x150] ss:$12 sps:$4 sm:$0xff]   ;;  %v1853_v12 = vld [vmem:[#allocation4 + $0x138] ss:$12 sps:$4 sm:$0xff]  }
  0x41   :  { %v1850_v9 = vld [vmem:[#allocation4 + $0x2d0] ss:$12 sps:$4 sm:$0xff]   ;;  %v1856_v13 = vld [vmem:[#allocation4 + $0x2b8] ss:$12 sps:$4 sm:$0xff]   ;;  %v1859_v16 = vld [vmem:[#allocation4 + $0x120] ss:$12 sps:$4 sm:$0xff]  }
  0x42   :  { %v1855_v10 = vld [vmem:[#allocation4 + $0x13c] ss:$12 sps:$4 sm:$0xff]   ;;  %v1861_v14 = vld [vmem:[#allocation4 + $0x124] ss:$12 sps:$4 sm:$0xff]   ;;  %v1862_v17 = vld [vmem:[#allocation4 + $0x2a0] ss:$12 sps:$4 sm:$0xff]  }
  0x43   :  { %296 = vmatpush1.bf16.msra.mxu0 %v1785_v27  ;;  %337 = vmatpush1.bf16.msra.mxu1 %v1786_v28  ;;  %v1858_v11 = vld [vmem:[#allocation4 + $0x2bc] ss:$12 sps:$4 sm:$0xff]   ;;  %v1864_v15 = vld [vmem:[#allocation4 + $0x2a4] ss:$12 sps:$4 sm:$0xff]   ;;  %v1867_v18 = vld [vmem:[#allocation4 + $0x10c] ss:$12 sps:$4 sm:$0xff]  }
  0x44   :  { %297 = vmatprep.subr.bf16.mxu0 %v1787_v29  ;;  %338 = vmatprep.subr.bf16.mxu1 %v1789_v30  ;;  %v1870_v19 = vld [vmem:[#allocation4 + $0x28c] ss:$12 sps:$4 sm:$0xff]   ;;  %v1865_v20 = vld [vmem:[#allocation4 + $0x108] ss:$12 sps:$4 sm:$0xff]   ;;  %v1871_v24 = vld [vmem:[#allocation4 + $0xf0] ss:$12 sps:$4 sm:$0xff]  }
  0x45   :  { %v1868_v21 = vld [vmem:[#allocation4 + $0x288] ss:$12 sps:$4 sm:$0xff]   ;;  %v1874_v25 = vld [vmem:[#allocation4 + $0x270] ss:$12 sps:$4 sm:$0xff]   ;;  %v1877_v28 = vld [vmem:[#allocation4 + $0xd8] ss:$12 sps:$4 sm:$0xff]  }
  0x46   :  { %v1873_v22 = vld [vmem:[#allocation4 + $0xf4] ss:$12 sps:$4 sm:$0xff]   ;;  %v1879_v26 = vld [vmem:[#allocation4 + $0xdc] ss:$12 sps:$4 sm:$0xff]   ;;  %v1880_v29 = vld [vmem:[#allocation4 + $0x258] ss:$12 sps:$4 sm:$0xff]  }
  0x47   :  { %298 = vmatpush1.bf16.msra.mxu0 %v1791_v31  ;;  %339 = vmatpush1.bf16.msra.mxu1 %v1792_v32  ;;  %v1876_v23 = vld [vmem:[#allocation4 + $0x274] ss:$12 sps:$4 sm:$0xff]   ;;  %v1882_v27 = vld [vmem:[#allocation4 + $0x25c] ss:$12 sps:$4 sm:$0xff]   ;;  %v1885_v30 = vld [vmem:[#allocation4 + $0xc4] ss:$12 sps:$4 sm:$0xff]  }
  0x48   :  { %1030 = vmatprep.subr.bf16.mxu0 %v1795_v33  ;;  %1071 = vmatprep.subr.bf16.mxu1 %v1798_v34  ;;  %v1888_v31 = vld [vmem:[#allocation4 + $0x244] ss:$12 sps:$4 sm:$0xff]   ;;  %v1883_v32 = vld [vmem:[#allocation4 + $0xc0] ss:$12 sps:$4 sm:$0xff]  }
  0x49   :  { %v1886_v33 = vld [vmem:[#allocation4 + $0x240] ss:$12 sps:$4 sm:$0xff]   ;;  %v1889_v34 = vld [vmem:[#allocation4 + $0x170] ss:$12 sps:$4 sm:$0xff]  }
  0x4a   :  { %316 = vmatmul.mubr.bf16.vlgmr.msra.gmra.mxu0 %v68_v35  ;;  %357 = vmatmul.mubr.bf16.vlgmr.msra.gmra.mxu1 %v68_v35  ;;  %v1890_v35 = vld [vmem:[#allocation4 + $0x2f0] ss:$12 sps:$4 sm:$0xff]  }
  0x4b   :  { %1031 = vmatpush1.bf16.msra.mxu0 %v1793_v36  ;;  %1072 = vmatpush1.bf16.msra.mxu1 %v1796_v37  ;;  %v103_v36 = vlaneseq }
  0x4c   :  { %1032 = vmatprep.subr.bf16.mxu0 %v1801_v38  ;;  %1073 = vmatprep.subr.bf16.mxu1 %v1804_v39 }
  0x4d   :  { %v2075_v37 = vshrl.u32 %v103_v36, 7  ;;  %v1924_v36 = vld [vmem:[#allocation6 + $0x30] sm:$0xff]  }
  0x4f   :  { %1033 = vmatpush1.bf16.msra.mxu0 %v1799_v40  ;;  %1074 = vmatpush1.bf16.msra.mxu1 %v1802_v41  ;;  %v105_v38 = vsub.s32 0, %v2075_v37  ;;  %v113_v39 = vsub.s32 2, %v2075_v37  ;;  %v101_v40 = vld [vmem:[%s2115_s2] sm:$0xf]  ;;  %v109_v41 = vsub.s32 1, %v2075_v37 }
  0x50   :  { %1034 = vmatprep.subr.bf16.mxu0 %v1807_v42  ;;  %1075 = vmatprep.subr.bf16.mxu1 %v1810_v43  ;;  %v117_v42 = vsub.s32 3, %v2075_v37  ;;  %v1613_v37 = vld [vmem:[%s2119_s6] ss:$0 sm:$0xff] }
  0x51   :  { %v106_v43 = vrot.slane %v101_v40, %v105_v38 }
  0x53   :  { %1035 = vmatpush1.bf16.msra.mxu0 %v1805_v44  ;;  %1076 = vmatpush1.bf16.msra.mxu1 %v1808_v45  ;;  %v114_v44 = vrot.slane %v101_v40, %v113_v39  ;;  %v110_v45 = vrot.slane %v101_v40, %v109_v41 }
  0x54   :  { %1036 = vmatprep.subr.bf16.mxu0 %v1813_v46  ;;  %1077 = vmatprep.subr.bf16.mxu1 %v1816_v47  ;;  %v118_v46 = vrot.slane %v101_v40, %v117_v42  ;;  %v1925_v40 = vld [vmem:[#allocation6 + $0x68] sm:$0xff]  }
  0x55   :  { %v1926_v42 = vld [vmem:[#allocation6 + $0x28] sm:$0xff]  }
  0x57   :  { %1037 = vmatpush1.bf16.msra.mxu0 %v1811_v48  ;;  %1078 = vmatpush1.bf16.msra.mxu1 %v1814_v49 }
  0x58   :  { %1038 = vmatprep.subr.bf16.mxu0 %v1819_v50  ;;  %1079 = vmatprep.subr.bf16.mxu1 %v1822_v51 }
  0x5b   :  { %1039 = vmatpush1.bf16.msra.mxu0 %v1817_v52  ;;  %1080 = vmatpush1.bf16.msra.mxu1 %v1820_v53 }
  0x5c   :  { %1040 = vmatprep.subr.bf16.mxu0 %v1825_v54  ;;  %1081 = vmatprep.subr.bf16.mxu1 %v1828_v55 }
  0x5f   :  { %1041 = vmatpush1.bf16.msra.mxu0 %v1823_v56  ;;  %1082 = vmatpush1.bf16.msra.mxu1 %v1826_v57 }
  0x60   :  { %1042 = vmatprep.subr.bf16.mxu0 %v1831_v58  ;;  %1083 = vmatprep.subr.bf16.mxu1 %v1834_v59 }
  0x63   :  { %1043 = vmatpush1.bf16.msra.mxu0 %v1829_v60  ;;  %1084 = vmatpush1.bf16.msra.mxu1 %v1832_v61 }
  0x64   :  { %1044 = vmatprep.subr.bf16.mxu0 %v1837_v62  ;;  %1085 = vmatprep.subr.bf16.mxu1 %v1840_v63 }
  0x67   :  { %1045 = vmatpush1.bf16.msra.mxu0 %v1835_v0  ;;  %1086 = vmatpush1.bf16.msra.mxu1 %v1838_v1 }
  0x68   :  { %1046 = vmatprep.subr.bf16.mxu0 %v1843_v2  ;;  %1087 = vmatprep.subr.bf16.mxu1 %v1846_v3  ;;  %v1891_v2 = vld [vmem:[#allocation4 + $0xb0] ss:$12 sps:$4 sm:$0xff]  }
  0x69   :  { %v1892_v3 = vld [vmem:[#allocation4 + $0x230] ss:$12 sps:$4 sm:$0xff]  }
  0x6b   :  { %1047 = vmatpush2.bf16.msra.mxu0 %v1841_v4  ;;  %1088 = vmatpush2.bf16.msra.mxu1 %v1844_v5  ;;  %v1893_v5 = vld [vmem:[#allocation4 + $0x158] ss:$12 sps:$4 sm:$0xff]  }
  0x6c   :  { %1048 = vmatprep.subr.bf16.mxu0 %v1849_v6  ;;  %1089 = vmatprep.subr.bf16.mxu1 %v1852_v7  ;;  %v1894_v6 = vld [vmem:[#allocation4 + $0x2d8] ss:$12 sps:$4 sm:$0xff]  }
  0x6d   :  { %v1895_v7 = vld [vmem:[#allocation4 + $0x98] ss:$12 sps:$4 sm:$0xff]  }
  0x6f   :  { %1049 = vmatpush2.bf16.msra.mxu0 %v1847_v8  ;;  %1090 = vmatpush2.bf16.msra.mxu1 %v1850_v9  ;;  %v1896_v8 = vld [vmem:[#allocation4 + $0x218] ss:$12 sps:$4 sm:$0xff]   ;;  %v1897_v9 = vld [vmem:[#allocation4 + $0x140] ss:$12 sps:$4 sm:$0xff]  }
  0x70   :  { %1050 = vmatprep.subr.bf16.mxu0 %v1855_v10  ;;  %1091 = vmatprep.subr.bf16.mxu1 %v1858_v11  ;;  %v1898_v10 = vld [vmem:[#allocation4 + $0x2c0] ss:$12 sps:$4 sm:$0xff]  }
  0x71   :  { %v1899_v11 = vld [vmem:[#allocation4 + $0x80] ss:$12 sps:$4 sm:$0xff]  }
  0x73   :  { %1051 = vmatpush2.bf16.msra.mxu0 %v1853_v12  ;;  %1092 = vmatpush2.bf16.msra.mxu1 %v1856_v13  ;;  %v1900_v12 = vld [vmem:[#allocation4 + $0x200] ss:$12 sps:$4 sm:$0xff]   ;;  %v1901_v13 = vld [vmem:[#allocation4 + $0x128] ss:$12 sps:$4 sm:$0xff]  }
  0x74   :  { %1052 = vmatprep.subr.bf16.mxu0 %v1861_v14  ;;  %1093 = vmatprep.subr.bf16.mxu1 %v1864_v15  ;;  %v1902_v14 = vld [vmem:[#allocation4 + $0x2a8] ss:$12 sps:$4 sm:$0xff]  }
  0x75   :  { %v1903_v15 = vld [vmem:[#allocation4 + $0x68] ss:$12 sps:$4 sm:$0xff]  }
  0x77   :  { %1053 = vmatpush2.bf16.msra.mxu0 %v1859_v16  ;;  %1094 = vmatpush2.bf16.msra.mxu1 %v1862_v17  ;;  %v1904_v16 = vld [vmem:[#allocation4 + $0x1e8] ss:$12 sps:$4 sm:$0xff]   ;;  %v1905_v17 = vld [vmem:[#allocation4 + $0x110] ss:$12 sps:$4 sm:$0xff]  }
  0x78   :  { %1054 = vmatprep.subr.bf16.mxu0 %v1867_v18  ;;  %1095 = vmatprep.subr.bf16.mxu1 %v1870_v19  ;;  %v1906_v18 = vld [vmem:[#allocation4 + $0x290] ss:$12 sps:$4 sm:$0xff]  }
  0x79   :  { %v1907_v19 = vld [vmem:[#allocation4 + $0x50] ss:$12 sps:$4 sm:$0xff]  }
  0x7b   :  { %1055 = vmatpush2.bf16.msra.mxu0 %v1865_v20  ;;  %1096 = vmatpush2.bf16.msra.mxu1 %v1868_v21  ;;  %v1908_v20 = vld [vmem:[#allocation4 + $0x1d0] ss:$12 sps:$4 sm:$0xff]   ;;  %v1909_v21 = vld [vmem:[#allocation4 + $0xf8] ss:$12 sps:$4 sm:$0xff]  }
  0x7c   :  { %1056 = vmatprep.subr.bf16.mxu0 %v1873_v22  ;;  %1097 = vmatprep.subr.bf16.mxu1 %v1876_v23  ;;  %v1910_v22 = vld [vmem:[#allocation4 + $0x278] ss:$12 sps:$4 sm:$0xff]  }
  0x7d   :  { %v1911_v23 = vld [vmem:[#allocation4 + $0x38] ss:$12 sps:$4 sm:$0xff]  }
  0x7f   :  { %1057 = vmatpush2.bf16.msra.mxu0 %v1871_v24  ;;  %1098 = vmatpush2.bf16.msra.mxu1 %v1874_v25  ;;  %v1912_v24 = vld [vmem:[#allocation4 + $0x1b8] ss:$12 sps:$4 sm:$0xff]   ;;  %v1913_v25 = vld [vmem:[#allocation4 + $0xe0] ss:$12 sps:$4 sm:$0xff]  }
  0x80   :  { %1058 = vmatprep.subr.bf16.mxu0 %v1879_v26  ;;  %1099 = vmatprep.subr.bf16.mxu1 %v1882_v27  ;;  %v1914_v26 = vld [vmem:[#allocation4 + $0x260] ss:$12 sps:$4 sm:$0xff]  }
  0x81   :  { %v1915_v27 = vld [vmem:[#allocation4 + $0x20] ss:$12 sps:$4 sm:$0xff]  }
  0x83   :  { %1059 = vmatpush2.bf16.msra.mxu0 %v1877_v28  ;;  %1100 = vmatpush2.bf16.msra.mxu1 %v1880_v29  ;;  %v1916_v28 = vld [vmem:[#allocation4 + $0x1a0] ss:$12 sps:$4 sm:$0xff]   ;;  %v1917_v29 = vld [vmem:[#allocation4 + $0xc8] ss:$12 sps:$4 sm:$0xff]  }
  0x84   :  { %1060 = vmatprep.subr.bf16.mxu0 %v1885_v30  ;;  %1101 = vmatprep.subr.bf16.mxu1 %v1888_v31  ;;  %v1918_v30 = vld [vmem:[#allocation4 + $0x248] ss:$12 sps:$4 sm:$0xff]  }
  0x85   :  { %v1919_v31 = vld [vmem:[#allocation4 + $0x8] ss:$12 sps:$4 sm:$0xff]  }
  0x87   :  { %1061 = vmatpush2.bf16.msra.mxu0 %v1883_v32  ;;  %1102 = vmatpush2.bf16.msra.mxu1 %v1886_v33  ;;  %v1920_v32 = vld [vmem:[#allocation4 + $0x188] ss:$12 sps:$4 sm:$0xff]   ;;  %v1921_v33 = vld [vmem:[#allocation6 + $0x78] sm:$0xff]  }
  0x88   :  { %1638 = vmatprep.subr.bf16.mxu0 %v1889_v34  ;;  %1660 = vmatprep.subr.bf16.mxu1 %v1890_v35  ;;  %v1922_v34 = vld [vmem:[#allocation6 + $0x38] sm:$0xff]   ;;  %v1923_v35 = vld [vmem:[#allocation6 + $0x70] sm:$0xff]  }
 0x10a   :  { %v317_v47 = vpop.f32.mrf.mxu0  ;;  %v358_v48 = vpop.f32.mrf.mxu1 }
 0x10b   :  { %v318_v49 = vadd.f32 %v317_v47, %v106_v43  ;;  %v359_v50 = vadd.f32 %v358_v48, %v114_v44  ;;  %v1927_v43 = vld [vmem:[#allocation6 + $0x60] sm:$0xff]   ;;  %v1931_v47 = vld [vmem:[#allocation6 + $0x50] sm:$0xff]  }
 0x10c   :  { %v319_v51 = vpop.f32.mrf.mxu0  ;;  %v360_v52 = vpop.f32.mrf.mxu1  ;;  %v1928_v44 = vld [vmem:[#allocation6 + $0x20] sm:$0xff]   ;;  %v1932_v48 = vld [vmem:[#allocation6 + $0x10] sm:$0xff]  }
 0x10d   :  { %v367_v53 = vmax.f32 %v359_v50, 0.0  ;;  %v320_v54 = vadd.f32 %v319_v51, %v110_v45  ;;  %v361_v55 = vadd.f32 %v360_v52, %v118_v46  ;;  %v365_v56 = vmax.f32 %v318_v49, 0.0  ;;  %v1929_v45 = vld [vmem:[#allocation6 + $0x58] sm:$0xff]   ;;  %v1933_v49 = vld [vmem:[#allocation6 + $0x48] sm:$0xff]   ;;  %v1935_v51 = vld [vmem:[#allocation6 + $0x40] sm:$0xff]  }
 0x10e   :  { %v321_v57 = vpop.f32.mrf.mxu0  ;;  %v362_v58 = vpop.f32.mrf.mxu1  ;;  %v1930_v46 = vld [vmem:[#allocation6 + $0x18] sm:$0xff]   ;;  %v1934_v50 = vld [vmem:[#allocation6 + $0x8] sm:$0xff]   ;;  %v1936_v52 = vld [vmem:[#allocation6] sm:$0xff]  }
 0x10f   :  { %v366_v59 = vmax.f32 %v320_v54, 0.0  ;;  %v368_v60 = vmax.f32 %v361_v55, 0.0  ;;  %v2090_v61 = vpack.c.bf16 %v367_v53, %v367_v53  ;;  %v2092_v4 = vpack.c.bf16 %v365_v56, %v365_v56  ;;  %v1937_v53 = vld [vmem:[#allocation6 + $0xb8] sm:$0xff]   ;;  %v1938_v55 = vld [vmem:[#allocation6 + $0xb0] sm:$0xff]   ;;  %v1939_v56 = vld [vmem:[#allocation6 + $0xa8] sm:$0xff]  }
 0x110   :  { %v322_v62 = vpop.f32.mrf.mxu0  ;;  %v363_v63 = vpop.f32.mrf.mxu1  ;;  %v2021_v54 = vmov 0.0   ;;  %v1940_v57 = vld [vmem:[#allocation6 + $0xa0] sm:$0xff]   ;;  %v1941_v58 = vld [vmem:[#allocation6 + $0x98] sm:$0xff]  }
 0x111   :  { %v370_v0 = vpack.c.bf16 %v366_v59, %v366_v59  ;;  %v372_v1 = vpack.c.bf16 %v368_v60, %v368_v60  ;;  %v1942_v59 = vld [vmem:[#allocation6 + $0x90] sm:$0xff]   ;;  %v1943_v60 = vld [vmem:[#allocation6 + $0x88] sm:$0xff]   ;;  %v501_v62 = vld [vmem:[%s2117_s4] sm:$0x7] }
 0x112   :  { %v506_v63 = vrot.slane %v501_v62, %v105_v38 }
 0x113   :  { %1062 = vmatprep.mubr.bf16.mxu0 %v370_v0  ;;  %1103 = vmatprep.mubr.bf16.mxu1 %v372_v1 }
 0x114   :  { %1063 = vmatmul.mubr.bf16.vlgmr.msra.gmra.mxu0 %v2092_v4  ;;  %1104 = vmatmul.mubr.bf16.vlgmr.msra.gmra.mxu1 %v2090_v61 }
 0x115   :  { %1639 = vmatpush3.bf16.msra.mxu0 %v1891_v2  ;;  %1661 = vmatpush3.bf16.msra.mxu1 %v1892_v3 }
 0x116   :  { %1144 = vmatprep.mubr.bf16.mxu0 %v370_v0  ;;  %1184 = vmatprep.mubr.bf16.mxu1 %v372_v1  ;;  %v510_v0 = vrot.slane %v501_v62, %v109_v41 }
 0x117   :  { %1640 = vmatprep.subr.bf16.mxu0 %v1893_v5  ;;  %1662 = vmatprep.subr.bf16.mxu1 %v1894_v6 }
 0x119   :  { %1641 = vmatpush3.bf16.msra.mxu0 %v1895_v7  ;;  %1663 = vmatpush3.bf16.msra.mxu1 %v1896_v8 }
 0x11a   :  { %1642 = vmatprep.subr.bf16.mxu0 %v1897_v9  ;;  %1664 = vmatprep.subr.bf16.mxu1 %v1898_v10 }
 0x11d   :  { %1643 = vmatpush3.bf16.msra.mxu0 %v1899_v11  ;;  %1665 = vmatpush3.bf16.msra.mxu1 %v1900_v12 }
 0x11e   :  { %1644 = vmatprep.subr.bf16.mxu0 %v1901_v13  ;;  %1666 = vmatprep.subr.bf16.mxu1 %v1902_v14 }
 0x121   :  { %1645 = vmatpush3.bf16.msra.mxu0 %v1903_v15  ;;  %1667 = vmatpush3.bf16.msra.mxu1 %v1904_v16 }
 0x122   :  { %1646 = vmatprep.subr.bf16.mxu0 %v1905_v17  ;;  %1668 = vmatprep.subr.bf16.mxu1 %v1906_v18  ;;  %v514_v17 = vrot.slane %v501_v62, %v113_v39 }
 0x125   :  { %1647 = vmatpush3.bf16.msra.mxu0 %v1907_v19  ;;  %1669 = vmatpush3.bf16.msra.mxu1 %v1908_v20 }
 0x126   :  { %1648 = vmatprep.subr.bf16.mxu0 %v1909_v21  ;;  %1670 = vmatprep.subr.bf16.mxu1 %v1910_v22 }
 0x129   :  { %1649 = vmatpush3.bf16.msra.mxu0 %v1911_v23  ;;  %1671 = vmatpush3.bf16.msra.mxu1 %v1912_v24 }
 0x12a   :  { %1650 = vmatprep.subr.bf16.mxu0 %v1913_v25  ;;  %1672 = vmatprep.subr.bf16.mxu1 %v1914_v26 }
 0x12d   :  { %1651 = vmatpush3.bf16.msra.mxu0 %v1915_v27  ;;  %1673 = vmatpush3.bf16.msra.mxu1 %v1916_v28 }
 0x12e   :  { %1652 = vmatprep.subr.bf16.mxu0 %v1917_v29  ;;  %1674 = vmatprep.subr.bf16.mxu1 %v1918_v30 }
 0x131   :  { %1653 = vmatpush3.bf16.msra.mxu0 %v1919_v31  ;;  %1675 = vmatpush3.bf16.msra.mxu1 %v1920_v32 }
 0x132   :  { %1682 = vmatprep.subr.bf16.mxu0 %v1921_v33  ;;  %1713 = vmatprep.subr.bf16.mxu1 %v2021_v54 }
 0x134   :  { %1145 = vmatmul.mubr.bf16.vlgmr.msra.gmra.mxu0 %v2092_v4  ;;  %1185 = vmatmul.mubr.bf16.vlgmr.msra.gmra.mxu1 %v2090_v61  ;;  %v1944_v61 = vld [vmem:[#allocation6 + $0x80] sm:$0xff]  }
 0x135   :  { %1683 = vmatpush3.bf16.msra.mxu0 %v1922_v34  ;;  %1714 = vmatpush3.bf16.msra.mxu1 %v1937_v53 }
 0x136   :  { %1684 = vmatprep.subr.bf16.mxu0 %v1923_v35  ;;  %1715 = vmatprep.subr.bf16.mxu1 %v2021_v54 }
 0x137   :  { %1729 = vmatprep.mubr.msk.bf16.mxu1 %vm2022_vm0, %v2021_v54 }
 0x139   :  { %1685 = vmatpush3.bf16.msra.mxu0 %v1924_v36  ;;  %1716 = vmatpush3.bf16.msra.mxu1 %v1938_v55 }
 0x13a   :  { %1686 = vmatprep.subr.bf16.mxu0 %v1925_v40  ;;  %1717 = vmatprep.subr.bf16.mxu1 %v2021_v54 }
 0x13d   :  { %1687 = vmatpush3.bf16.msra.mxu0 %v1926_v42  ;;  %1718 = vmatpush3.bf16.msra.mxu1 %v1939_v56 }
 0x13e   :  { %1688 = vmatprep.subr.bf16.mxu0 %v1927_v43  ;;  %1719 = vmatprep.subr.bf16.mxu1 %v2021_v54 }
 0x141   :  { %1689 = vmatpush3.bf16.msra.mxu0 %v1928_v44  ;;  %1720 = vmatpush3.bf16.msra.mxu1 %v1940_v57 }
 0x142   :  { %1690 = vmatprep.subr.bf16.mxu0 %v1929_v45  ;;  %1721 = vmatprep.subr.bf16.mxu1 %v2021_v54 }
 0x145   :  { %1691 = vmatpush3.bf16.msra.mxu0 %v1930_v46  ;;  %1722 = vmatpush3.bf16.msra.mxu1 %v1941_v58 }
 0x146   :  { %1692 = vmatprep.subr.bf16.mxu0 %v1931_v47  ;;  %1723 = vmatprep.subr.bf16.mxu1 %v2021_v54 }
 0x149   :  { %1693 = vmatpush3.bf16.msra.mxu0 %v1932_v48  ;;  %1724 = vmatpush3.bf16.msra.mxu1 %v1942_v59 }
 0x14a   :  { %1694 = vmatprep.subr.bf16.mxu0 %v1933_v49  ;;  %1725 = vmatprep.subr.bf16.mxu1 %v2021_v54 }
 0x14d   :  { %1695 = vmatpush3.bf16.msra.mxu0 %v1934_v50  ;;  %1726 = vmatpush3.bf16.msra.mxu1 %v1943_v60 }
 0x14e   :  { %1696 = vmatprep.subr.bf16.mxu0 %v1935_v51  ;;  %1727 = vmatprep.subr.bf16.mxu1 %v2021_v54 }
 0x151   :  { %1697 = vmatpush3.bf16.msra.mxu0 %v1936_v52  ;;  %1728 = vmatpush3.bf16.msra.mxu1 %v1944_v61 }
 0x1d4   :  { %v1064_v1 = vpop.f32.mrf.mxu0  ;;  %v1105_v2 = vpop.f32.mrf.mxu1 }
 0x1d5   :  { %v1065_v3 = vadd.f32 %v1064_v1, %v506_v63 }
 0x1d6   :  { %v1066_v4 = vpop.f32.mrf.mxu0  ;;  %v1107_v5 = vpop.f32.mrf.mxu1 }
 0x1d7   :  { %v1106_v6 = vadd.f32 %v1105_v2, %v1065_v3  ;;  %v1067_v7 = vadd.f32 %v1066_v4, %v510_v0 }
 0x1d8   :  { %v1068_v8 = vpop.f32.mrf.mxu0  ;;  %v1109_v9 = vpop.f32.mrf.mxu1 }
 0x1d9   :  { %v1108_v10 = vadd.f32 %v1107_v5, %v1067_v7  ;;  %v1192_v11 = vmax.f32 %v1106_v6, 0.0 }
 0x1da   :  { %v1069_v12 = vpop.f32.mrf.mxu0  ;;  %v1110_v13 = vpop.f32.mrf.mxu1 }
 0x1db   :  { %v1193_v14 = vmax.f32 %v1108_v10, 0.0  ;;  %v1195_v16 = vpack.c.bf16 %v1192_v11, %v1192_v11 }
 0x1dd   :  { %v1196_v15 = vpack.c.bf16 %v1193_v14, %v1193_v14 }
 0x1df   :  { %1429 = vmatprep.mubr.bf16.mxu0 %v1196_v15 }
 0x1e0   :  { %1430 = vmatmul.mubr.bf16.vlgmr.msra.gmra.mxu0 %v1195_v16 }
 0x1f4   :  { %v1654_v38 = vpop.f32.mrf.mxu0  ;;  %v1676_v41 = vpop.f32.mrf.mxu1 }
 0x1f6   :  { %v1655_v18 = vpop.f32.mrf.mxu0  ;;  %v1677_v19 = vpop.f32.mrf.mxu1 }
 0x1f7   :  { %v1656_v20 = vadd.f32 %v1655_v18, %v1654_v38  ;;  %v1678_v24 = vadd.f32 %v1677_v19, %v1676_v41 }
 0x1f8   :  { %v1657_v21 = vpop.f32.mrf.mxu0  ;;  %v1679_v22 = vpop.f32.mrf.mxu1 }
 0x1f9   :  { %v1147_v23 = vadd.f32 %v1656_v20, %v514_v17 }
 0x1fa   :  { %v1658_v25 = vpop.f32.mrf.mxu0  ;;  %v1680_v26 = vpop.f32.mrf.mxu1 }
 0x1fb   :  { %v1187_v27 = vadd.f32 %v1678_v24, %v1147_v23 }
 0x1fd   :  { %v1194_v28 = vmax.f32 %v1187_v27, 0.0 }
 0x1ff   :  { %v1197_v29 = vpack.c.bf16 %v1194_v28, %v1194_v28 }
 0x201   :  { %1730 = vmatmul.mubr.bf16.vlgmr.msra.gmra.mxu1 %v1197_v29 }
 0x2a0   :  { %v1698_v30 = vpop.f32.mrf.mxu0 }
 0x2a2   :  { %v1699_v31 = vpop.f32.mrf.mxu0 }
 0x2a3   :  { %v1700_v34 = vadd.f32 %v1699_v31, %v1698_v30 }
 0x2a4   :  { %v1701_v32 = vpop.f32.mrf.mxu0 }
 0x2a5   :  { %v1432_v39 = vadd.f32 %v1700_v34, %v1613_v37 }
 0x2a6   :  { %v1702_v33 = vpop.f32.mrf.mxu0 }
 0x2c1   :  { %v1471_v35 = vpop.f32.mrf.mxu1 }
 0x2c2   :  { %v1472_v36 = vadd.f32 %v1471_v35, %v1432_v39 }
 0x2c3   :  { %v1731_v40 = vpop.f32.mrf.mxu1 }
 0x2c4   :  { %1945 = vtanh.f32 %v1472_v36 }
 0x2c5   :  { %v1474_v42 = vpop.f32.mrf.mxu1 }
 0x2c7   :  { %v1732_v43 = vpop.f32.mrf.mxu1 }
 0x2d1   :  { %v1946_v44 = vpop.eup %1945 }
 0x2d2   :  { %1478 = vst [vmem:[%s2120_s7] sm:$0xff] %v1946_v44 }
 0x2d3   :  { %1483 = vsyncpa [#allocation3], 1 }
 0x2d4   :  { %1484 = vsyncpa [#allocation5], 1 }

</bundles_post_ra>
